<compile_context>
chip_gen: v6e
topology: v6e:2x2x1
jax: 0.10.0
libtpu: 0.0.40
codegen_flags: <defaults>
</compile_context>

<pallas_src>
import jax
import jax.numpy as jnp
from jax import lax
from jax.experimental import pallas as pl
from jax.experimental.pallas import tpu as pltpu

LANE = 128
SUBLANE = 8
MAX_TILE_ROWS = 4096      # (4096, 128) f32 block = 2 MiB per input
SUB_ROWS = 1024           # in-block accumulation chunk (bounds live vregs)
NCHUNK_MAX = 2            # leading "parallel" axis -> both TensorCores on v7x
MIN_ROWS = 16             # smallest slab handed to the kernel


def _ceil_to(x, m):
    return -(-x // m) * m


def tanh_loss(y_t, y_prime_t, reduction="mean"):
    assert y_t.shape == y_prime_t.shape
    orig_count = y_t.size

    # Flatten to a lane-dense 2-D slab.  Inputs stay in their original dtype;
    # the only upcast to f32 happens inside the kernel.
    yf = jnp.ravel(y_t)
    ypf = jnp.ravel(y_prime_t)
    n = yf.shape[0]

    # Pad only when the flat length is not lane-aligned (or the input is tiny).
    # Zero padding contributes exactly 0 since tanh(0) == 0.
    # TODO(synk): lane-unaligned inputs (n % 128 != 0) still pay one pad copy; a
    # fully copy-free path would need 1-D blocks with riskier VMEM layout.
    target_n = max(_ceil_to(n, LANE), MIN_ROWS * LANE)
    if target_n != n:
        yf = jnp.pad(yf, (0, target_n - n))
        ypf = jnp.pad(ypf, (0, target_n - n))

    rows = target_n // LANE
    y2 = yf.reshape(rows, LANE)
    yp2 = ypf.reshape(rows, LANE)

    # Tile sizing: target >= NCHUNK_MAX blocks (keeps both v7x cores fed), cap
    # at MAX_TILE_ROWS, keep tile_r a multiple of SUB_ROWS when large (so the
    # sub-chunk loop divides evenly) and of 16 otherwise (bf16 tiling safety).
    half_rows = -(-rows // NCHUNK_MAX)
    if half_rows >= SUB_ROWS:
        tile_r = min(MAX_TILE_ROWS, _ceil_to(half_rows, SUB_ROWS))
    else:
        tile_r = _ceil_to(half_rows, 16)
    num_blocks = -(-rows // tile_r)
    nchunk = NCHUNK_MAX if num_blocks >= NCHUNK_MAX else 1
    grid_r = -(-num_blocks // nchunk)
    dup = nchunk * grid_r != num_blocks          # clamped duplicate steps exist

    sub_r = SUB_ROWS if tile_r > SUB_ROWS else tile_r
    nsub = tile_r // sub_r                       # exact by construction

    last_rows = rows - (num_blocks - 1) * tile_r  # valid rows in final block
    has_tail = last_rows != tile_r                # static python bool
    last_blk = num_blocks - 1

    if dup:
        # Clamp duplicate trailing steps so their DMA stays in bounds; their
        # contribution is skipped in-kernel.
        def in_map(c, i):
            return (jnp.minimum(c * grid_r + i, num_blocks - 1), 0)
    else:
        def in_map(c, i):
            return (c * grid_r + i, 0)

    def kernel(y_ref, yp_ref, out_ref):
        c = pl.program_id(0)
        i = pl.program_id(1)
        gb = c * grid_r + i          # logical (unclamped) block index

        @pl.when(i == 0)
        def _():
            out_ref[...] = jnp.zeros_like(out_ref)

        def accumulate(masked):
            # Static sub-chunk loop; each chunk adds into the VMEM-resident
            # output block, so live vregs stay bounded at large tile_r.
            for s in range(nsub):
                r0 = s * sub_r
                if masked and r0 >= last_rows:
                    break            # fully-invalid trailing sub-chunks: skip
                e = (y_ref[pl.ds(r0, sub_r), :].astype(jnp.float32)
                     - yp_ref[pl.ds(r0, sub_r), :].astype(jnp.float32))
                v = e * jnp.tanh(e)
                if masked and (r0 + sub_r > last_rows):
                    rid = r0 + lax.broadcasted_iota(jnp.int32, (sub_r, LANE), 0)
                    v = jnp.where(rid < last_rows, v, 0.0)
                out_ref[...] += v.reshape(sub_r // SUBLANE, SUBLANE, LANE).sum(axis=0)

        if has_tail:
            @pl.when(gb < last_blk)
            def _():
                accumulate(False)

            @pl.when(gb == last_blk)
            def _():
                accumulate(True)
        elif dup:
            @pl.when(gb < num_blocks)
            def _():
                accumulate(False)
        else:
            accumulate(False)

    bytes_accessed = (orig_count * (y_t.dtype.itemsize + y_prime_t.dtype.itemsize)
                      + nchunk * SUBLANE * LANE * 4)
    partials = pl.pallas_call(
        kernel,
        out_shape=jax.ShapeDtypeStruct((nchunk * SUBLANE, LANE), jnp.float32),
        grid_spec=pltpu.PrefetchScalarGridSpec(
            num_scalar_prefetch=0,
            grid=(nchunk, grid_r),
            in_specs=[
                pl.BlockSpec((tile_r, LANE), in_map),
                pl.BlockSpec((tile_r, LANE), in_map),
            ],
            out_specs=pl.BlockSpec((SUBLANE, LANE), lambda c, i: (c, 0)),
        ),
        compiler_params=pltpu.CompilerParams(
            dimension_semantics=("parallel", "arbitrary"),
            vmem_limit_bytes=32 * 1024 * 1024,
        ),
        cost_estimate=pl.CostEstimate(
            flops=3 * orig_count,
            transcendentals=orig_count,
            bytes_accessed=bytes_accessed,
        ),
    )(y2, yp2)

    total = jnp.sum(partials)
    if reduction == "mean":
        return total / jnp.float32(orig_count)
    elif reduction == "sum":
        return total
    else:
        raise ValueError(f"unsupported reduction: {reduction}")


if __name__ == "__main__":
    key = jax.random.PRNGKey(0)
    k1, k2, k3, k4, k5, k6 = jax.random.split(key, 6)

    # Case 1: f32, lane- and tile-aligned (2*4*16*16 = 2048 elements, no copies).
    shape = (2, 4, 16, 16)
    y_t = jax.random.normal(k1, shape, dtype=jnp.float32)
    y_prime_t = jax.random.normal(k2, shape, dtype=jnp.float32)
    out_mean = jax.block_until_ready(tanh_loss(y_t, y_prime_t, reduction="mean"))
    out_sum = jax.block_until_ready(tanh_loss(y_t, y_prime_t, reduction="sum"))
    e = y_t - y_prime_t
    ref = e * jnp.tanh(e)
    assert jnp.allclose(out_mean, jnp.mean(ref), rtol=1e-5, atol=1e-6)
    assert jnp.allclose(out_sum, jnp.sum(ref), rtol=1e-5, atol=1e-5)

    # Case 2: bf16, lane-unaligned (exercises the small pad path + in-kernel upcast).
    shape2 = (3, 50, 7)
    yb = jax.random.normal(k3, shape2, dtype=jnp.bfloat16)
    ypb = jax.random.normal(k4, shape2, dtype=jnp.bfloat16)
    out2 = jax.block_until_ready(tanh_loss(yb, ypb, reduction="mean"))
    e2 = yb.astype(jnp.float32) - ypb.astype(jnp.float32)
    ref2 = jnp.mean(e2 * jnp.tanh(e2))
    assert jnp.allclose(out2, ref2, rtol=1e-4, atol=1e-5)

    # Case 3: f32, 128-aligned but rows not a tile multiple (exercises the
    # two-chunk grid and the gated final-block row mask, zero host-side copies).
    shape3 = (5, 9, 128)
    yc = jax.random.normal(k5, shape3, dtype=jnp.float32)
    ypc = jax.random.normal(k6, shape3, dtype=jnp.float32)
    out3 = jax.block_until_ready(tanh_loss(yc, ypc, reduction="sum"))
    e3 = yc - ypc
    ref3 = jnp.sum(e3 * jnp.tanh(e3))
    assert jnp.allclose(out3, ref3, rtol=1e-5, atol=1e-4)

    print("KERNEL_OK")
</pallas_src>

<mosaic_0001>
module attributes {stable_mosaic.version = 11 : i64} {
  func.func @kernel(%arg0: i32, %arg1: i32, %arg2: memref<16x128xf32, #tpu.memory_space<vmem>>, %arg3: memref<16x128xf32, #tpu.memory_space<vmem>>, %arg4: memref<8x128xf32, #tpu.memory_space<vmem>>) attributes {dimension_semantics = [#tpu.dimension_semantics<parallel>, #tpu.dimension_semantics<arbitrary>], iteration_bounds = array<i64: 1, 1>, scalar_prefetch = 0 : i64, scratch_operands = 0 : i64, tpu.core_type = #tpu.core_type<tc>, window_params = [{transform_indices = @transform_0, window_bounds = array<i64: 16, 128>}, {transform_indices = @transform_1, window_bounds = array<i64: 16, 128>}, {transform_indices = @transform_2, window_bounds = array<i64: 8, 128>}]} {
    %c0_i32 = arith.constant 0 : i32
    %0 = arith.cmpi eq, %arg1, %c0_i32 : i32
    %1 = arith.extui %0 : i1 to i32
    %c0_i32_0 = arith.constant 0 : i32
    %2 = arith.cmpi ne, %1, %c0_i32_0 : i32
    scf.if %2 {
      %cst_8 = arith.constant 0.000000e+00 : f32
      %13 = vector.broadcast %cst_8 : f32 to vector<8x128xf32>
      %c0_9 = arith.constant 0 : index
      %c0_10 = arith.constant 0 : index
      %14 = vector.load %arg4[%c0_9, %c0_10] : memref<8x128xf32, #tpu.memory_space<vmem>>, vector<8x128xf32>
      tpu.vector_store %arg4[%c0_9, %c0_10], %13 {strides = array<i32>} : memref<8x128xf32, #tpu.memory_space<vmem>>, vector<8x128xf32>,
    } else {
    }
    %c0 = arith.constant 0 : index
    %c0_1 = arith.constant 0 : index
    %3 = vector.load %arg2[%c0, %c0_1] : memref<16x128xf32, #tpu.memory_space<vmem>>, vector<16x128xf32>
    %c0_2 = arith.constant 0 : index
    %c0_3 = arith.constant 0 : index
    %4 = vector.load %arg3[%c0_2, %c0_3] : memref<16x128xf32, #tpu.memory_space<vmem>>, vector<16x128xf32>
    %5 = arith.subf %3, %4 : vector<16x128xf32>
    %6 = math.tanh %5 : vector<16x128xf32>
    %7 = arith.mulf %5, %6 : vector<16x128xf32>
    %c0_4 = arith.constant 0 : index
    %c0_5 = arith.constant 0 : index
    %8 = vector.load %arg4[%c0_4, %c0_5] : memref<8x128xf32, #tpu.memory_space<vmem>>, vector<8x128xf32>
    %9 = vector.shape_cast %7 : vector<16x128xf32> to vector<2x8x128xf32>
    %cst = arith.constant dense<0.000000e+00> : vector<8x128xf32>
    %10 = vector.multi_reduction <add>, %9, %cst [0] : vector<2x8x128xf32> to vector<8x128xf32>
    %11 = arith.addf %8, %10 : vector<8x128xf32>
    %c0_6 = arith.constant 0 : index
    %c0_7 = arith.constant 0 : index
    %12 = vector.load %arg4[%c0_6, %c0_7] : memref<8x128xf32, #tpu.memory_space<vmem>>, vector<8x128xf32>
    tpu.vector_store %arg4[%c0_6, %c0_7], %11 {strides = array<i32>} : memref<8x128xf32, #tpu.memory_space<vmem>>, vector<8x128xf32>,
    return
  }
  func.func @transform_0(%arg0: i32, %arg1: i32) -> (i32, i32) {
    %c1_i32 = arith.constant 1 : i32
    %0 = arith.muli %arg0, %c1_i32 : i32
    %1 = arith.addi %0, %arg1 : i32
    %c0_i32 = arith.constant 0 : i32
    %c0_i32_0 = arith.constant 0 : i32
    return %1, %c0_i32 : i32, i32
  }
  func.func @transform_1(%arg0: i32, %arg1: i32) -> (i32, i32) {
    %c1_i32 = arith.constant 1 : i32
    %0 = arith.muli %arg0, %c1_i32 : i32
    %1 = arith.addi %0, %arg1 : i32
    %c0_i32 = arith.constant 0 : i32
    %c0_i32_0 = arith.constant 0 : i32
    return %1, %c0_i32 : i32, i32
  }
  func.func @transform_2(%arg0: i32, %arg1: i32) -> (i32, i32) {
    %c0_i32 = arith.constant 0 : i32
    %c0_i32_0 = arith.constant 0 : i32
    return %arg0, %c0_i32 : i32, i32
  }
}

</mosaic_0001>

<bundles_post_ra>
// kernel: tpu_custom_call.1
= control target key start
LH: loop header
LB: loop body
LE: loop exit
PB: predicated region body
PF: predicated region fallthrough
CT: control target
= control target key end

     0   :  { %7 = vsyncpa [#allocation3], 0  ;;  %s192_s0 = inlined_call_operand.hbm [shape: f32[16,128], index: 0, kind: input, shape index: {}]   ;;  %s193_s1 = inlined_call_operand.hbm [shape: f32[16,128], index: 1, kind: input, shape index: {}]   ;;  %s194_s2 = inlined_call_operand.hbm [shape: f32[8,128], index: 2, kind: output, shape index: {}]  }
   0x1   :  { %8 = vsyncpa [#allocation6], 0 }
   0x2   :  { %9 = vsyncpa [#allocation4], 0  ;;  %s163_s9 = smov [#allocation2]  }
   0x3   :  { %s19_s10 = sshll.u32 %s163_s9, 4  ;;  %s20_s10 = int_to_ptr.vmem [resolvable:$true] %s19_s10 }
   0x4   :  { %s105_s11 = scalar_lea.vmem %s20_s10, 256  ;;  %p110_p1 = scmp.lt.s32.totalorder %s20_s10, %s20_s10 }
   0x5   :  { %p106_p0 = scmp.ne.s32.totalorder %s20_s10, %s105_s11  ;;  %p111_p2 = scmp.lt.s32.totalorder %s105_s11, %s105_s11 }
   0x7   :  { %p112_p3 = por %p111_p2, %p110_p1 }
   0x9   :  { %p113_p4 = pnand %p112_p3, %p106_p0 }
   0xb   :  { %116 = shalt.err (!%p113_p4)
}
   0xc   :  { %s164_s12 = smov 128   ;;  %s165_s13 = smov 8  }
   0xd   :  { %25 = dma.hbm_to_vmem [thread:$0]  %s192_s0, 256, %s20_s10, [#allocation3], %s164_s12, %s164_s12, %s165_s13  }
   0xe   :  { %s166_s16 = smov [#allocation5]  }
   0xf   :  { %s35_s17 = sshll.u32 %s166_s16, 4  ;;  %s36_s17 = int_to_ptr.vmem [resolvable:$true] %s35_s17 }
  0x10   :  { %s125_s18 = scalar_lea.vmem %s36_s17, 256  ;;  %p130_p6 = scmp.lt.s32.totalorder %s36_s17, %s36_s17 }
  0x11   :  { %p126_p5 = scmp.ne.s32.totalorder %s36_s17, %s125_s18  ;;  %p131_p7 = scmp.lt.s32.totalorder %s125_s18, %s125_s18 }
  0x13   :  { %p132_p8 = por %p131_p7, %p130_p6 }
  0x15   :  { %p133_p9 = pnand %p132_p8, %p126_p5 }
  0x17   :  { %136 = shalt.err (!%p133_p9)
}
  0x18   :  { %41 = dma.hbm_to_vmem [thread:$0]  %s193_s1, 256, %s36_s17, [#allocation6], %s164_s12, %s164_s12, %s165_s13  }
  0x19   :  { %157 = dma.done.wait [#allocation3], 256  }
  0x1a   :  { %158 = vsyncadd [#allocation3], 4294967040 }
  0x1b   :  { %159 = dma.done.wait [#allocation6], 256  }
  0x1c   :  { %160 = vsyncadd [#allocation6], 4294967040  ;;  %v57_v0 = vld [vmem:[#allocation2] sm:$0xff]  ;;  %v58_v1 = vld [vmem:[#allocation2 + $0x8] sm:$0xff]  ;;  %s167_s0 = smov [#allocation7]  }
  0x1d   :  { %v59_v2 = vld [vmem:[#allocation5] sm:$0xff]  ;;  %v60_v3 = vld [vmem:[#allocation5 + $0x8] sm:$0xff]  ;;  %s77_s21 = sshll.u32 %s167_s0, 4  ;;  %s78_s21 = int_to_ptr.vmem [resolvable:$true] %s77_s21 }
  0x1e   :  { %v61_v4 = vsub.f32 %v57_v0, %v59_v2  ;;  %v62_v5 = vsub.f32 %v58_v1, %v60_v3  ;;  %s137_s1 = scalar_lea.vmem %s78_s21, 128  ;;  %p142_p11 = scmp.lt.s32.totalorder %s78_s21, %s78_s21 }
  0x1f   :  { %p138_p10 = scmp.ne.s32.totalorder %s78_s21, %s137_s1  ;;  %p143_p12 = scmp.lt.s32.totalorder %s137_s1, %s137_s1 }
  0x20   :  { %93 = vtanh.f32 %v61_v4 }
  0x21   :  { %95 = vtanh.f32 %v62_v5  ;;  %p144_p13 = por %p143_p12, %p142_p11 }
  0x23   :  { %p145_p0 = pnand %p144_p13, %p138_p10 }
  0x2d   :  { %v94_v6 = vpop.eup %93 }
  0x2e   :  { %v96_v7 = vpop.eup %95  ;;  %v65_v8 = vmul.f32 %v94_v6, %v61_v4 }
  0x2f   :  { %v66_v9 = vmul.f32 %v96_v7, %v62_v5 }
  0x31   :  { %v68_v10 = vadd.f32 %v66_v9, %v65_v8 }
  0x33   :  { %70 = vst [vmem:[#allocation7] sm:$0xff] %v68_v10 }
  0x34   :  { %148 = shalt.err (!%p145_p0)
}
  0x35   :  { %80 = dma.vmem_to_hbm [thread:$0]  %s78_s21, 128, %s194_s2, [#allocation4]  }
  0x36   :  { %161 = dma.done.wait [#allocation4], 128  }
  0x37   :  { %162 = vsyncadd [#allocation4], 4294967168 }
  0x38   :  { %84 = vsyncpa [#allocation3], 1 }
  0x39   :  { %85 = vsyncpa [#allocation6], 1 }
  0x3a   :  { %86 = vsyncpa [#allocation4], 1 }

</bundles_post_ra>
